<compile_context>
chip_gen: v6e
topology: v6e:2x2x1
jax: 0.10.0
libtpu: 0.0.40
codegen_flags: <defaults>
</compile_context>

<pallas_src>
import jax
import jax.numpy as jnp
from jax import lax
from jax.experimental import pallas as pl
from jax.experimental.pallas import tpu as pltpu

num_hidden = 2
num_l1 = 25
num_l2 = 25
num_out = 1

_LANE = 128
_SUBLANE = 8
_HID_PAD = 32          # 25 -> 32: hidden dim padded to a SUBLANE multiple (not 128 lanes)
_OUT_ROWS_PAD = 8      # 1 -> 8 output rows for the final (8,32) @ (32,TILE_B) matmul


def _round_up(n, m):
    return (n + m - 1) // m * m


def _sigmoid(z):
    # Single EUP transcendental per element: 0.5*(tanh(z/2)+1) == 1/(1+exp(-z)).
    return 0.5 * (jnp.tanh(0.5 * z) + 1.0)


def _mlp_kernel(x_ref, w1_ref, b1_ref, w2_ref, b2_ref, w3_ref, b3_ref, o_ref):
    # x block: (TILE_B, F) with batch rows on sublanes; all activations below keep
    # the batch on LANES and the 32-padded hidden dim on SUBLANES.
    x = x_ref[...]

    # Layer 1: contract the F (lane) axes of w1 (32, F) and x (TILE_B, F) -> (32, TILE_B).
    # dot_general contraction avoids materialising any x transpose in VMEM.
    h1 = lax.dot_general(w1_ref[...], x, (((1,), (1,)), ((), ())),
                         preferred_element_type=jnp.float32)
    h1 = _sigmoid(h1 + b1_ref[...])                  # padded rows 25..31 hold 0.5

    # Layer 2: (32, 32) @ (32, TILE_B) -> (32, TILE_B).  Padded columns of w2 are zero,
    # so the 0.5 garbage rows of h1 contribute exactly 0.
    h2 = _sigmoid(jnp.dot(w2_ref[...], h1, preferred_element_type=jnp.float32)
                  + b2_ref[...])

    # Layer 3: (8, 32) @ (32, TILE_B) -> (8, TILE_B); row 0 is the real output and the
    # (1, TILE_B) store is lane-dense (unmasked vst).  Padded w3 columns are zero.
    out_rows = jnp.dot(w3_ref[...], h2, preferred_element_type=jnp.float32)
    o_ref[...] = (out_rows[0:1, :] + b3_ref[...]).astype(o_ref.dtype)


def prepare_params(params, dtype=jnp.float32):
    """One-time host-side glue: zero-pad weights to sublane-aligned MXU shapes.

    dtype=jnp.bfloat16 halves the weight/x HBM stream (use on v5e/v6e once the
    kernel is mem-bound); biases stay f32 since they are added post-matmul.
    """
    f32 = jnp.float32
    num_features = params["W_1"].shape[1]
    # W_1 kept in (out_rows, in) orientation: (32, F); padded rows are zero.
    w1 = jnp.zeros((_HID_PAD, num_features), f32).at[:num_l1, :].set(params["W_1"])
    b1 = jnp.zeros((_HID_PAD, 1), f32).at[:num_l1, 0].set(params["b_1"])
    # Padded COLUMNS (>= num_l1) MUST be zero so padded h1 rows contribute nothing.
    w2 = jnp.zeros((_HID_PAD, _HID_PAD), f32).at[:num_l2, :num_l1].set(params["W_2"])
    b2 = jnp.zeros((_HID_PAD, 1), f32).at[:num_l2, 0].set(params["b_2"])
    w3 = jnp.zeros((_OUT_ROWS_PAD, _HID_PAD), f32).at[:num_out, :num_l2].set(params["W_3"])
    b3 = params["b_3"].reshape(1, 1).astype(f32)
    return (w1.astype(dtype), b1, w2.astype(dtype), b2, w3.astype(dtype), b3)


def net_forward(x, prepared, tile_b=8192):
    """Pallas forward pass of Net (num_hidden == 2).

    x: (B, num_features) float32
    prepared: output of prepare_params(params)
    tile_b: batch rows per grid step (multiple of 128; x DMA per step = tile_b*F*dtype bytes).
    """
    w1, b1, w2, b2, w3, b3 = prepared
    B, F = x.shape
    if x.dtype != w1.dtype:
        x = x.astype(w1.dtype)

    # Tile sizing: multiple of 128 (batch rides the lane axis), capped by the batch.
    tile_b = _round_up(max(_LANE, min(tile_b, B)), _LANE)
    # Keep >= 2 grid tiles when the batch allows it, so v7x's two TensorCores both
    # get work under dimension_semantics=("parallel",).
    if B > _LANE and _round_up(B, tile_b) // tile_b < 2:
        tile_b = _round_up((B + 1) // 2, _LANE)
    B_pad = _round_up(B, tile_b)
    if B_pad != B:
        x = jnp.pad(x, ((0, B_pad - B), (0, 0)))
    num_tiles = B_pad // tile_b

    # Weights / biases: constant index_map -> resident in VMEM across all grid steps.
    full = lambda arr: pl.BlockSpec(arr.shape, lambda i, _nd=arr.ndim: (0,) * _nd)

    out = pl.pallas_call(
        _mlp_kernel,
        out_shape=jax.ShapeDtypeStruct((num_tiles, 1, tile_b), jnp.float32),
        grid=(num_tiles,),
        in_specs=[
            # Streamed x tiles (double-buffered by the auto-pipeliner).
            # TODO(synk): if profiling shows the x DMA exposed after the EUP/layout
            # fixes, add pipeline_mode=pl.Buffered(3) here.
            pl.BlockSpec((tile_b, F), lambda i: (i, 0)),
            full(w1), full(b1), full(w2), full(b2), full(w3), full(b3),
        ],
        # Squeezed leading dim -> kernel sees a (1, tile_b) lane-dense output row.
        out_specs=pl.BlockSpec((None, 1, tile_b), lambda i: (i, 0, 0)),
        compiler_params=pltpu.CompilerParams(
            dimension_semantics=("parallel",),      # shard batch tiles across TCs
            vmem_limit_bytes=32 * 1024 * 1024,      # explicit (v5e default is 16 MiB)
        ),
    )(x, w1, b1, w2, b2, w3, b3)

    # (num_tiles, 1, tile_b) row-major == batch order; drop padded rows.
    return out.reshape(B_pad, 1)[:B]


def init_params(key, num_features):
    """Deterministic xavier-normal-like init (matches shapes of the PyTorch module)."""
    def xavier_normal(k, shape):
        fan_out, fan_in = shape
        std = (2.0 / (fan_in + fan_out)) ** 0.5
        return std * jax.random.normal(k, shape, dtype=jnp.float32)

    k1, k2, k3 = jax.random.split(key, 3)
    return {
        "W_1": xavier_normal(k1, (num_l1, num_features)),
        "b_1": jnp.zeros((num_l1,), jnp.float32),
        "W_2": xavier_normal(k2, (num_l2, num_l1)),
        "b_2": jnp.zeros((num_l2,), jnp.float32),
        "W_3": xavier_normal(k3, (num_out, num_l2)),
        "b_3": jnp.zeros((num_out,), jnp.float32),
    }


def reference_forward(x, p):
    h1 = jax.nn.sigmoid(x @ p["W_1"].T + p["b_1"])
    h2 = jax.nn.sigmoid(h1 @ p["W_2"].T + p["b_2"])
    return h2 @ p["W_3"].T + p["b_3"]


if __name__ == "__main__":
    key = jax.random.PRNGKey(0)
    kx, kp = jax.random.split(key)
    batch, num_features = 300, 32  # non-multiple of the tile -> exercises padding path
    x = jax.random.normal(kx, (batch, num_features), dtype=jnp.float32)
    params = init_params(kp, num_features)
    prepared = prepare_params(params)

    # Small tile so the 1-D batch grid runs several pipelined steps even at this size.
    out = net_forward(x, prepared, tile_b=128)
    out = jax.block_until_ready(out)

    ref = reference_forward(x, params)
    assert out.shape == (batch, num_out)
    assert jnp.allclose(out, ref, atol=1e-5, rtol=1e-5)
    print("KERNEL_OK")
</pallas_src>

<mosaic_0001>
module attributes {stable_mosaic.version = 11 : i64} {
  func.func @_mlp_kernel(%arg0: i32, %arg1: memref<128x32xf32, #tpu.memory_space<vmem>>, %arg2: memref<32x32xf32, #tpu.memory_space<vmem>>, %arg3: memref<32x1xf32, #tpu.memory_space<vmem>>, %arg4: memref<32x32xf32, #tpu.memory_space<vmem>>, %arg5: memref<32x1xf32, #tpu.memory_space<vmem>>, %arg6: memref<8x32xf32, #tpu.memory_space<vmem>>, %arg7: memref<1x1xf32, #tpu.memory_space<vmem>>, %arg8: memref<1x1x128xf32, #tpu.memory_space<vmem>>) attributes {dimension_semantics = [#tpu.dimension_semantics<parallel>], iteration_bounds = array<i64: 3>, scalar_prefetch = 0 : i64, scratch_operands = 0 : i64, tpu.core_type = #tpu.core_type<tc>, window_params = [{transform_indices = @transform_0, window_bounds = array<i64: 128, 32>}, {pipeline_mode = #tpu.pipeline_mode<synchronous>, transform_indices = @transform_1, window_bounds = array<i64: 32, 32>}, {pipeline_mode = #tpu.pipeline_mode<synchronous>, transform_indices = @transform_2, window_bounds = array<i64: 32, 1>}, {pipeline_mode = #tpu.pipeline_mode<synchronous>, transform_indices = @transform_3, window_bounds = array<i64: 32, 32>}, {pipeline_mode = #tpu.pipeline_mode<synchronous>, transform_indices = @transform_4, window_bounds = array<i64: 32, 1>}, {pipeline_mode = #tpu.pipeline_mode<synchronous>, transform_indices = @transform_5, window_bounds = array<i64: 8, 32>}, {pipeline_mode = #tpu.pipeline_mode<synchronous>, transform_indices = @transform_6, window_bounds = array<i64: 1, 1>}, {transform_indices = @transform_7, window_bounds = array<i64: 1, 1, 128>}]} {
    %c0 = arith.constant 0 : index
    %c0_0 = arith.constant 0 : index
    %0 = vector.load %arg1[%c0, %c0_0] : memref<128x32xf32, #tpu.memory_space<vmem>>, vector<128x32xf32>
    %c0_1 = arith.constant 0 : index
    %c0_2 = arith.constant 0 : index
    %1 = vector.load %arg2[%c0_1, %c0_2] : memref<32x32xf32, #tpu.memory_space<vmem>>, vector<32x32xf32>
    %cst = arith.constant dense<0.000000e+00> : vector<32x128xf32>
    %2 = tpu.matmul %1, %0, %cst {dimension_numbers = #tpu.dot_dimension_numbers<[1], [1], [0], [0], [0, 0, 1, 0], [], []>} : vector<32x32xf32>, vector<128x32xf32>, vector<32x128xf32> -> vector<32x128xf32>
    %c0_3 = arith.constant 0 : index
    %c0_4 = arith.constant 0 : index
    %3 = vector.load %arg3[%c0_3, %c0_4] : memref<32x1xf32, #tpu.memory_space<vmem>>, vector<32x1xf32>
    %4 = vector.broadcast %3 : vector<32x1xf32> to vector<32x128xf32>
    %5 = arith.addf %2, %4 : vector<32x128xf32>
    %cst_5 = arith.constant 5.000000e-01 : f32
    %6 = vector.broadcast %cst_5 : f32 to vector<32x128xf32>
    %7 = arith.mulf %6, %5 : vector<32x128xf32>
    %8 = math.tanh %7 : vector<32x128xf32>
    %cst_6 = arith.constant 1.000000e+00 : f32
    %9 = vector.broadcast %cst_6 : f32 to vector<32x128xf32>
    %10 = arith.addf %8, %9 : vector<32x128xf32>
    %cst_7 = arith.constant 5.000000e-01 : f32
    %11 = vector.broadcast %cst_7 : f32 to vector<32x128xf32>
    %12 = arith.mulf %11, %10 : vector<32x128xf32>
    %c0_8 = arith.constant 0 : index
    %c0_9 = arith.constant 0 : index
    %13 = vector.load %arg4[%c0_8, %c0_9] : memref<32x32xf32, #tpu.memory_space<vmem>>, vector<32x32xf32>
    %cst_10 = arith.constant dense<0.000000e+00> : vector<32x128xf32>
    %14 = tpu.matmul %13, %12, %cst_10 {dimension_numbers = #tpu.dot_dimension_numbers<[1], [0], [0], [1], [0, 0, 1, 1], [], []>} : vector<32x32xf32>, vector<32x128xf32>, vector<32x128xf32> -> vector<32x128xf32>
    %c0_11 = arith.constant 0 : index
    %c0_12 = arith.constant 0 : index
    %15 = vector.load %arg5[%c0_11, %c0_12] : memref<32x1xf32, #tpu.memory_space<vmem>>, vector<32x1xf32>
    %16 = vector.broadcast %15 : vector<32x1xf32> to vector<32x128xf32>
    %17 = arith.addf %14, %16 : vector<32x128xf32>
    %cst_13 = arith.constant 5.000000e-01 : f32
    %18 = vector.broadcast %cst_13 : f32 to vector<32x128xf32>
    %19 = arith.mulf %18, %17 : vector<32x128xf32>
    %20 = math.tanh %19 : vector<32x128xf32>
    %cst_14 = arith.constant 1.000000e+00 : f32
    %21 = vector.broadcast %cst_14 : f32 to vector<32x128xf32>
    %22 = arith.addf %20, %21 : vector<32x128xf32>
    %cst_15 = arith.constant 5.000000e-01 : f32
    %23 = vector.broadcast %cst_15 : f32 to vector<32x128xf32>
    %24 = arith.mulf %23, %22 : vector<32x128xf32>
    %c0_16 = arith.constant 0 : index
    %c0_17 = arith.constant 0 : index
    %25 = vector.load %arg6[%c0_16, %c0_17] : memref<8x32xf32, #tpu.memory_space<vmem>>, vector<8x32xf32>
    %cst_18 = arith.constant dense<0.000000e+00> : vector<8x128xf32>
    %26 = tpu.matmul %25, %24, %cst_18 {dimension_numbers = #tpu.dot_dimension_numbers<[1], [0], [0], [1], [0, 0, 1, 1], [], []>} : vector<8x32xf32>, vector<32x128xf32>, vector<8x128xf32> -> vector<8x128xf32>
    %27 = vector.extract_strided_slice %26 {offsets = [0, 0], sizes = [1, 128], strides = [1, 1]} : vector<8x128xf32> to vector<1x128xf32>
    %c0_19 = arith.constant 0 : index
    %c0_20 = arith.constant 0 : index
    %28 = vector.load %arg7[%c0_19, %c0_20] : memref<1x1xf32, #tpu.memory_space<vmem>>, vector<1x1xf32>
    %29 = vector.broadcast %28 : vector<1x1xf32> to vector<1x128xf32>
    %30 = arith.addf %27, %29 : vector<1x128xf32>
    %c0_21 = arith.constant 0 : index
    %c0_22 = arith.constant 0 : index
    %c0_23 = arith.constant 0 : index
    %31 = vector.load %arg8[%c0_21, %c0_22, %c0_23] : memref<1x1x128xf32, #tpu.memory_space<vmem>>, vector<1x1x128xf32>
    %32 = vector.shape_cast %31 : vector<1x1x128xf32> to vector<1x128xf32>
    %33 = vector.shape_cast %30 : vector<1x128xf32> to vector<1x1x128xf32>
    tpu.vector_store %arg8[%c0_21, %c0_22, %c0_23], %33 {strides = array<i32>} : memref<1x1x128xf32, #tpu.memory_space<vmem>>, vector<1x1x128xf32>,
    return
  }
  func.func @transform_0(%arg0: i32) -> (i32, i32) {
    %c0_i32 = arith.constant 0 : i32
    %c0_i32_0 = arith.constant 0 : i32
    return %arg0, %c0_i32 : i32, i32
  }
  func.func @transform_1(%arg0: i32) -> (i32, i32) {
    %c0_i32 = arith.constant 0 : i32
    %c0_i32_0 = arith.constant 0 : i32
    %c0_i32_1 = arith.constant 0 : i32
    return %c0_i32, %c0_i32_0 : i32, i32
  }
  func.func @transform_2(%arg0: i32) -> (i32, i32) {
    %c0_i32 = arith.constant 0 : i32
    %c0_i32_0 = arith.constant 0 : i32
    %c0_i32_1 = arith.constant 0 : i32
    return %c0_i32, %c0_i32_0 : i32, i32
  }
  func.func @transform_3(%arg0: i32) -> (i32, i32) {
    %c0_i32 = arith.constant 0 : i32
    %c0_i32_0 = arith.constant 0 : i32
    %c0_i32_1 = arith.constant 0 : i32
    return %c0_i32, %c0_i32_0 : i32, i32
  }
  func.func @transform_4(%arg0: i32) -> (i32, i32) {
    %c0_i32 = arith.constant 0 : i32
    %c0_i32_0 = arith.constant 0 : i32
    %c0_i32_1 = arith.constant 0 : i32
    return %c0_i32, %c0_i32_0 : i32, i32
  }
  func.func @transform_5(%arg0: i32) -> (i32, i32) {
    %c0_i32 = arith.constant 0 : i32
    %c0_i32_0 = arith.constant 0 : i32
    %c0_i32_1 = arith.constant 0 : i32
    return %c0_i32, %c0_i32_0 : i32, i32
  }
  func.func @transform_6(%arg0: i32) -> (i32, i32) {
    %c0_i32 = arith.constant 0 : i32
    %c0_i32_0 = arith.constant 0 : i32
    %c0_i32_1 = arith.constant 0 : i32
    return %c0_i32, %c0_i32_0 : i32, i32
  }
  func.func @transform_7(%arg0: i32) -> (i32, i32, i32) {
    %c0_i32 = arith.constant 0 : i32
    %c0_i32_0 = arith.constant 0 : i32
    %c0_i32_1 = arith.constant 0 : i32
    return %arg0, %c0_i32, %c0_i32_0 : i32, i32, i32
  }
}

</mosaic_0001>

<bundles_post_ra>
// kernel: tpu_custom_call.1
= control target key start
LH: loop header
LB: loop body
LE: loop exit
PB: predicated region body
PF: predicated region fallthrough
CT: control target
= control target key end

     0   :  { %s1282_s0 = inlined_call_operand.vmem [shape: f32[384,32], index: 0, kind: input, shape index: {}]   ;;  %s1283_s1 = inlined_call_operand.vmem [shape: f32[32,32], index: 1, kind: input, shape index: {}]   ;;  %s1284_s2 = inlined_call_operand.vmem [shape: f32[32,1], index: 2, kind: input, shape index: {}]   ;;  %s1285_s3 = inlined_call_operand.vmem [shape: f32[32,32], index: 3, kind: input, shape index: {}]   ;;  %s1286_s4 = inlined_call_operand.vmem [shape: f32[32,1], index: 4, kind: input, shape index: {}]   ;;  %s1287_s5 = inlined_call_operand.vmem [shape: f32[8,32], index: 5, kind: input, shape index: {}]   ;;  %s1288_s6 = inlined_call_operand.<no memory space> [shape: f32[1,1], index: 6, kind: input, shape index: {}]   ;;  %s1289_s7 = inlined_call_operand.hbm [shape: f32[3,1,128], index: 7, kind: output, shape index: {}]  }
   0x1   :  { %v12_v0 = vstv %s1288_s6 }
   0x2   :  { %13 = vst [vmem:[#allocation2] sm:$0x1] %v12_v0 }
   0x3   :  { %14 = vsyncpa [#allocation4], 0 }
   0x4   :  { %16 = vsyncpa [#allocation4 + $0x1], 0  ;;  %s1080_s26 = smov 0   ;;  %s1082_s27 = smov 0  }
   0x5   :  { %s1084_s28 = smov 0   ;;  %s1086_s29 = smov 0  }
   0x6 LB: > { %s780_s6 = sadd.s32 4294967295, %s1031_s29   ;;  %s781_s30 = sadd.s32 4294967294, %s1031_s29   ;;  %s1031_s29 = sphi %s1086_s29, %s1295_s29   ;;  %s1027_s28 = sphi %s1084_s28, %s1294_s28   ;;  %s1023_s27 = sphi %s1082_s27, %s1293_s27   ;;  %s1019_s26 = sphi %s1080_s26, %s1292_s26  }
   0x7   : > { %s1103_s8 = sadd.s32 1, %s1031_s29   ;;  %s181_s9 = sadd.s32 1, %s1027_s28 }
   0x8   : > { %s178_s10 = ssub.s32 %s1031_s29, %s1103_s8  ;;  %p191_p0 = scmp.ne.s32.totalorder %s1027_s28, %s1023_s27 }
   0x9   : > { %p179_p1 = scmp.eq.s32.totalorder %s178_s10, 0  ;;  %p192_p2 = scmp.eq.s32.totalorder %s780_s6, 2 }
   0xa   : > { %p197_p3 = scmp.ne.s32.totalorder %s1023_s27, %s1019_s26  ;;  %p198_p4 = scmp.eq.s32.totalorder %s781_s30, 2 }
   0xb   : > { %s1113_s11 = scalar_select %p179_p1, %s1027_s28, %s181_s9  }
   0xc   : > { %p1115_p5 = por %p192_p2, %p191_p0  ;;  %p1119_p6 = por %p198_p4, %p197_p3 }
   0xd   : > { %p784_p7 = scmp.ge.s32.totalorder %s1031_s29, 1  ;;  %p243_p8 = scmp.lt.s32.totalorder %s1031_s29, 4 }
   0xf   : > { %p244_p9 = pnand %p784_p7, %p243_p8 }
  0x10   : > { %s1125_s14 = sshll.u32 (!%p244_p9), %s780_s6, 4  ;;  %s272_s24 = sand.u32 (!%p244_p9), 1, %s1023_s27  }
  0x11   : > { %247 = sbr.rel (%p244_p9) target bundleno = 752 (0x2f0), region = 48  ;;  %p275_p10 = scmp.lt.s32.totalorder (!%p244_p9), %s1125_s14, 47 }
  0x12   : > { %s273_s25 = scalar_lea.vmem (!%p244_p9), [#allocation3], %s272_s24  ;;  %s714_s15 = scalar_lea.sflag (!%p244_p9), [#allocation4], %s272_s24 }
  0x13   : > { %s1036_s17 = smov (!%p244_p9), [#allocation3]  }
  0x14   : > { %s975_s18 = sshll.u32 (!%p244_p9), %s1036_s17, 4  ;;  %s976_s18 = int_to_ptr.vmem [resolvable:$false] %s975_s18 }
  0x15   : > { %s977_s19 = scalar_lea.vmem (!%p244_p9), %s976_s18, 32 }
  0x16   : > { %vm324_vm0 = vcmask 261120   ;;  %v296_v1 = vld [vmem:[%s1283_s1] sm:$0xff]  ;;  %v1033_v2 = vmov 0   ;;  %v303_v3 = vld [vmem:[%s1284_s2 + $0x18] sm:$0xff]  ;;  %v301_v4 = vld [vmem:[%s1284_s2 + $0x8] sm:$0xff]  ;;  %s276_s21 = scalar_select %p275_p10, %s1125_s14, 47 }
  0x17   : > { %880 = vmatprep.mubr.msk.f32.mxu0 %vm324_vm0, %v296_v1  ;;  %953 = vset.pattern.permute.xlu0 %v1033_v2  ;;  %v302_v5 = vld [vmem:[%s1284_s2 + $0x10] sm:$0xff]  ;;  %v300_v6 = vld [vmem:[%s1284_s2] sm:$0xff]  ;;  %v493_v9 = vld [vmem:[%s1286_s4 + $0x18] sm:$0xff]  ;;  %v1034_v63 = vmov 0.0   ;;  %vm1035_vm1 = vmmov 0  }
  0x18   : > { %321 = vperm.xlu0 %953, %v303_v3   ;;  %954 = vset.pattern.permute.xlu1 %v1033_v2  ;;  %s786_s6 = sshll.u32 %s276_s21, 3  ;;  %v492_v10 = vld [vmem:[%s1286_s4 + $0x10] sm:$0xff]  ;;  %v491_v12 = vld [vmem:[%s1286_s4 + $0x8] sm:$0xff]  ;;  %v490_v13 = vld [vmem:[%s1286_s4] sm:$0xff] }
  0x19   : > { %311 = vperm.xlu1 %954, %v301_v4   ;;  %s1148_s10 = scalar_lea.vmem %s1282_s0, %s786_s6  ;;  %v701_v15 = vld [vmem:[#allocation2] sm:$0x1]  ;;  %v297_v28 = vld [vmem:[%s1283_s1 + $0x8] sm:$0xff]  ;;  %v298_v29 = vld [vmem:[%s1283_s1 + $0x10] sm:$0xff]  ;;  %s726_s6 = sshll.u32 %s273_s25, 4  ;;  %s727_s6 = int_to_ptr.vmem [resolvable:$true] %s726_s6 }
  0x1a   : > { %v295_v7 = vld [vmem:[%s1148_s10 + $0x78] sm:$0xff]  ;;  %v294_v8 = vld [vmem:[%s1148_s10 + $0x70] sm:$0xff]  ;;  %v293_v11 = vld [vmem:[%s1148_s10 + $0x68] sm:$0xff]  ;;  %s971_s16 = scalar_lea.vmem %s727_s6, 16  ;;  %p978_p0 = scmp.lt.s32.totalorder %s727_s6, %s976_s18 }
  0x1b   : > { %848 = vmatprep.subr.msk.mxu0 %vm324_vm0, %v295_v7  ;;  %v292_v14 = vld [vmem:[%s1148_s10 + $0x60] sm:$0xff]  ;;  %v291_v16 = vld [vmem:[%s1148_s10 + $0x58] sm:$0xff]  ;;  %v290_v17 = vld [vmem:[%s1148_s10 + $0x50] sm:$0xff]  ;;  %p972_p11 = scmp.ne.s32.totalorder %s727_s6, %s971_s16  ;;  %p979_p1 = scmp.lt.s32.totalorder %s977_s19, %s971_s16 }
  0x1c   : > { %316 = vperm.xlu0 %953, %v302_v5   ;;  %849 = vmatpush3.xpose.msk.msra.mxu0 %vm324_vm0, %v295_v7  ;;  %v289_v18 = vld [vmem:[%s1148_s10 + $0x48] sm:$0xff]  ;;  %v288_v19 = vld [vmem:[%s1148_s10 + $0x40] sm:$0xff]  ;;  %v287_v20 = vld [vmem:[%s1148_s10 + $0x38] sm:$0xff] }
  0x1d   : > { %306 = vperm.xlu1 %954, %v300_v6   ;;  %850 = vmatprep.subr.msk.mxu0 %vm324_vm0, %v294_v8  ;;  %v286_v21 = vld [vmem:[%s1148_s10 + $0x30] sm:$0xff]  ;;  %v285_v22 = vld [vmem:[%s1148_s10 + $0x28] sm:$0xff]  ;;  %v284_v23 = vld [vmem:[%s1148_s10 + $0x20] sm:$0xff]  ;;  %p973_p12 = pnand %p972_p11, %p1115_p5  ;;  %p980_p2 = por %p979_p1, %p978_p0 }
  0x1e   : > { %v283_v24 = vld [vmem:[%s1148_s10 + $0x18] sm:$0xff]  ;;  %v282_v25 = vld [vmem:[%s1148_s10 + $0x10] sm:$0xff]  ;;  %v281_v26 = vld [vmem:[%s1148_s10 + $0x8] sm:$0xff] }
  0x1f   : > { %v280_v27 = vld [vmem:[%s1148_s10] sm:$0xff]  ;;  %v299_v30 = vld [vmem:[%s1283_s1 + $0x18] sm:$0xff]  ;;  %v487_v60 = vld [vmem:[%s1285_s3 + $0x8] sm:$0xff]  ;;  %s1247_s10 = scalar_lea.hbm %s1289_s7, %s1125_s14  ;;  %p974_p13 = pneg %p973_p12 }
  0x20   : > { %511 = vperm.xlu0 %953, %v493_v9   ;;  %851 = vmatpush3.xpose.msk.msra.mxu0 %vm324_vm0, %v294_v8  ;;  %v486_v31 = vld [vmem:[%s1285_s3] sm:$0xff]  ;;  %v488_v61 = vld [vmem:[%s1285_s3 + $0x10] sm:$0xff]  ;;  %v489_v62 = vld [vmem:[%s1285_s3 + $0x18] sm:$0xff] }
  0x21   : > { %506 = vperm.xlu1 %954, %v492_v10   ;;  %852 = vmatprep.subr.msk.mxu0 %vm324_vm0, %v293_v11  ;;  %p981_p3 = pnand %p980_p2, %p974_p13 }
  0x22   : > { %894 = vmatprep.mubr.msk.f32.mxu1 %vm324_vm0, %v486_v31 }
  0x24   : > { %501 = vperm.xlu0 %953, %v491_v12   ;;  %853 = vmatpush3.xpose.msk.msra.mxu0 %vm324_vm0, %v293_v11 }
  0x25   : > { %496 = vperm.xlu1 %954, %v490_v13   ;;  %854 = vmatprep.subr.msk.mxu0 %vm324_vm0, %v292_v14 }
  0x28   : > { %704 = vperm.xlu0 %953, %v701_v15   ;;  %855 = vmatpush3.xpose.msk.msra.mxu0 %vm324_vm0, %v292_v14 }
  0x29   : > { %856 = vmatprep.subr.msk.mxu0 %vm324_vm0, %v291_v16 }
  0x2c   : > { %857 = vmatpush3.xpose.msk.msra.mxu0 %vm324_vm0, %v291_v16 }
  0x2d   : > { %858 = vmatprep.subr.msk.mxu0 %vm324_vm0, %v290_v17 }
  0x30   : > { %859 = vmatpush3.xpose.msk.msra.mxu0 %vm324_vm0, %v290_v17 }
  0x31   : > { %860 = vmatprep.subr.msk.mxu0 %vm324_vm0, %v289_v18 }
  0x34   : > { %861 = vmatpush3.xpose.msk.msra.mxu0 %vm324_vm0, %v289_v18 }
  0x35   : > { %862 = vmatprep.subr.msk.mxu0 %vm324_vm0, %v288_v19 }
  0x38   : > { %863 = vmatpush3.xpose.msk.msra.mxu0 %vm324_vm0, %v288_v19 }
  0x39   : > { %864 = vmatprep.subr.msk.mxu0 %vm324_vm0, %v287_v20 }
  0x3c   : > { %865 = vmatpush3.xpose.msk.msra.mxu0 %vm324_vm0, %v287_v20 }
  0x3d   : > { %866 = vmatprep.subr.msk.mxu0 %vm324_vm0, %v286_v21 }
  0x40   : > { %867 = vmatpush3.xpose.msk.msra.mxu0 %vm324_vm0, %v286_v21 }
  0x41   : > { %868 = vmatprep.subr.msk.mxu0 %vm324_vm0, %v285_v22 }
  0x44   : > { %869 = vmatpush3.xpose.msk.msra.mxu0 %vm324_vm0, %v285_v22 }
  0x45   : > { %870 = vmatprep.subr.msk.mxu0 %vm324_vm0, %v284_v23 }
  0x48   : > { %871 = vmatpush3.xpose.msk.msra.mxu0 %vm324_vm0, %v284_v23 }
  0x49   : > { %872 = vmatprep.subr.msk.mxu0 %vm324_vm0, %v283_v24 }
  0x4c   : > { %873 = vmatpush3.xpose.msk.msra.mxu0 %vm324_vm0, %v283_v24 }
  0x4d   : > { %874 = vmatprep.subr.msk.mxu0 %vm324_vm0, %v282_v25 }
  0x50   : > { %875 = vmatpush3.xpose.msk.msra.mxu0 %vm324_vm0, %v282_v25 }
  0x51   : > { %876 = vmatprep.subr.msk.mxu0 %vm324_vm0, %v281_v26 }
  0x54   : > { %877 = vmatpush3.xpose.msk.msra.mxu0 %vm324_vm0, %v281_v26 }
  0x55   : > { %878 = vmatprep.subr.msk.mxu0 %vm324_vm0, %v280_v27 }
  0x58   : > { %879 = vmatpush3.xpose.msk.msra.mxu0 %vm324_vm0, %v280_v27 }
  0x5b   : > { %881 = vmatmul.mubr.msk.f32.vlgmr.msra.gmra.mxu0 %vm324_vm0, %v297_v28  ;;  %v627_v28 = vld [vmem:[%s1287_s5] sm:$0xff] }
  0x5c   : > { %883 = vmatprep.mubr.msk.f32.mxu0 %vm324_vm0, %v298_v29  ;;  %v707_v29 = vlaneseq }
  0x5f   : > { %884 = vmatmul.mubr.msk.f32.gmra.mxu0 %vm324_vm0, %v299_v30  ;;  %v708_v30 = vshrl.u32 %v707_v29, 7 }
  0x61   : > { %v709_v31 = vsub.s32 0, %v708_v30 }
  0x93   : > { %v322_v33 = vpop.permute.xlu0 %321 }
  0x94   : > { %v312_v32 = vpop.permute.xlu1 %311 }
  0x97   : > { %v317_v42 = vpop.permute.xlu0 %316 }
  0x98   : > { %v307_v36 = vpop.permute.xlu1 %306 }
  0x9b   : > { %v512_v0 = vpop.permute.xlu0 %511 }
  0x9c   : > { %v507_v1 = vpop.permute.xlu1 %506 }
  0x9f   : > { %v502_v2 = vpop.permute.xlu0 %501 }
  0xa0   : > { %v497_v5 = vpop.permute.xlu1 %496 }
 0x11b   : > { %v882_v34 = vpop.f32.mrf.mxu0 }
 0x11c   : > { %v457_v35 = vadd.f32 %v882_v34, %v312_v32  ;;  %v705_v32 = vpop.permute.xlu0 %704 }
 0x11d   : > { %v451_v37 = vpop.f32.mrf.mxu0 }
 0x11e   : > { %v452_v38 = vadd.f32 %v451_v37, %v307_v36  ;;  %v471_v39 = vmul.f32 0.5, %v457_v35 }
 0x11f   : > { %v885_v40 = vpop.f32.mrf.mxu0 }
 0x120   : > { %v467_v41 = vadd.f32 %v885_v40, %v322_v33  ;;  %v470_v43 = vmul.f32 0.5, %v452_v38  ;;  %955 = vtanh.f32 %v471_v39  ;;  %v710_v33 = vrot.slane %v705_v32, %v709_v31 }
 0x121   : > { %v461_v44 = vpop.f32.mrf.mxu0 }
 0x122   : > { %v473_v45 = vmul.f32 0.5, %v467_v41  ;;  %v462_v46 = vadd.f32 %v461_v44, %v317_v42 }
 0x124   : > { %957 = vtanh.f32 %v473_v45  ;;  %v472_v47 = vmul.f32 0.5, %v462_v46 }
 0x125   : > { %959 = vtanh.f32 %v470_v43 }
 0x126   : > { %961 = vtanh.f32 %v472_v47 }
 0x12d   : > { %v956_v48 = vpop.eup %955 }
 0x12e   : > { %v479_v55 = vadd.f32 1.0, %v956_v48 }
 0x130   : > { %v483_v58 = vmul.f32 0.5, %v479_v55 }
 0x131   : > { %v958_v49 = vpop.eup %957 }
 0x132   : > { %v960_v50 = vpop.eup %959  ;;  %v481_v51 = vadd.f32 1.0, %v958_v49 }
 0x133   : > { %v962_v52 = vpop.eup %961  ;;  %v478_v57 = vadd.f32 1.0, %v960_v50 }
 0x134   : > { %v485_v53 = vmul.f32 0.5, %v481_v51  ;;  %v480_v54 = vadd.f32 1.0, %v962_v52 }
 0x135   : > { %v482_v59 = vmul.f32 0.5, %v478_v57 }
 0x136   : > { %886 = vmatprep.subr.mxu1 %v485_v53  ;;  %v484_v56 = vmul.f32 0.5, %v480_v54 }
 0x137   : > { %887 = vmatpush3.msra.mxu1 %v485_v53 }
 0x138   : > { %888 = vmatprep.subr.mxu1 %v484_v56 }
 0x139   : > { %889 = vmatpush3.msra.mxu1 %v484_v56 }
 0x13a   : > { %890 = vmatprep.subr.mxu1 %v483_v58 }
 0x13b   : > { %891 = vmatpush3.msra.mxu1 %v483_v58 }
 0x13c   : > { %892 = vmatprep.subr.mxu1 %v482_v59 }
 0x13d   : > { %893 = vmatpush3.msra.mxu1 %v482_v59 }
 0x13e   : > { %895 = vmatmul.mubr.msk.f32.vlgmr.msra.gmra.mxu1 %vm324_vm0, %v487_v60  ;;  %900 = vmatprep.subr.mxu1 %v1034_v63 }
 0x13f   : > { %897 = vmatprep.mubr.msk.f32.mxu1 %vm324_vm0, %v488_v61 }
 0x142   : > { %898 = vmatmul.mubr.msk.f32.gmra.mxu1 %vm324_vm0, %v489_v62 }
 0x143   : > { %908 = vmatprep.mubr.msk.f32.mxu1 %vm1035_vm1, %v1034_v63 }
 0x1fe   : > { %v896_v3 = vpop.f32.mrf.mxu1 }
 0x1ff   : > { %v598_v4 = vadd.f32 %v896_v3, %v502_v2 }
 0x200   : > { %v592_v6 = vpop.f32.mrf.mxu1 }
 0x201   : > { %v593_v7 = vadd.f32 %v592_v6, %v497_v5  ;;  %v612_v8 = vmul.f32 0.5, %v598_v4 }
 0x202   : > { %v899_v9 = vpop.f32.mrf.mxu1 }
 0x203   : > { %v608_v10 = vadd.f32 %v899_v9, %v512_v0  ;;  %v611_v11 = vmul.f32 0.5, %v593_v7  ;;  %963 = vtanh.f32 %v612_v8 }
 0x204   : > { %v602_v12 = vpop.f32.mrf.mxu1 }
 0x205   : > { %v614_v13 = vmul.f32 0.5, %v608_v10  ;;  %v603_v14 = vadd.f32 %v602_v12, %v507_v1 }
 0x207   : > { %965 = vtanh.f32 %v614_v13  ;;  %v613_v15 = vmul.f32 0.5, %v603_v14 }
 0x208   : > { %967 = vtanh.f32 %v611_v11 }
 0x209   : > { %969 = vtanh.f32 %v613_v15 }
 0x210   : > { %v964_v16 = vpop.eup %963 }
 0x211   : > { %v620_v21 = vadd.f32 1.0, %v964_v16 }
 0x213   : > { %v624_v26 = vmul.f32 0.5, %v620_v21 }
 0x214   : > { %v966_v17 = vpop.eup %965 }
 0x215   : > { %v968_v18 = vpop.eup %967  ;;  %v622_v19 = vadd.f32 1.0, %v966_v17 }
 0x216   : > { %v970_v20 = vpop.eup %969  ;;  %v619_v24 = vadd.f32 1.0, %v968_v18 }
 0x217   : > { %v626_v22 = vmul.f32 0.5, %v622_v19  ;;  %v621_v23 = vadd.f32 1.0, %v970_v20 }
 0x218   : > { %v623_v27 = vmul.f32 0.5, %v619_v24 }
 0x219   : > { %v625_v25 = vmul.f32 0.5, %v621_v23  ;;  %901 = vmatpush3.msra.mxu1 %v626_v22 }
 0x21a   : > { %902 = vmatprep.subr.mxu1 %v1034_v63 }
 0x21b   : > { %903 = vmatpush3.msra.mxu1 %v625_v25 }
 0x21c   : > { %904 = vmatprep.subr.mxu1 %v1034_v63 }
 0x21d   : > { %905 = vmatpush3.msra.mxu1 %v624_v26 }
 0x21e   : > { %906 = vmatprep.subr.mxu1 %v1034_v63 }
 0x21f   : > { %907 = vmatpush3.msra.mxu1 %v623_v27 }
 0x220   : > { %909 = vmatmul.mubr.msk.f32.vlgmr.msra.gmra.mxu1 %vm324_vm0, %v627_v28 }
 0x2e0   : > { %v697_v34 = vpop.f32.mrf.mxu1 }
 0x2e1   : > { %v711_v35 = vadd.f32 %v710_v33, %v697_v34 }
 0x2e2   : > { %v910_v36 = vpop.f32.mrf.mxu1 }
 0x2e3   : > { %712 = vst [vmem:[%s273_s25] sm:$0x1] %v711_v35 }
 0x2e4   : > { %984 = shalt.err (!%p981_p3)
}
 0x2e5   : > { %s985_s14 = scalar_lea.hbm %s1247_s10, 16  ;;  %s989_s22 = scalar_lea.hbm %s1289_s7, 48 }
 0x2e6   : > { %p986_p4 = scmp.ne.s32.totalorder %s1247_s10, %s985_s14  ;;  %p990_p9 = scmp.lt.s32.totalorder %s1247_s10, %s1289_s7 }
 0x2e7   : > { %p991_p10 = scmp.lt.s32.totalorder %s989_s22, %s985_s14 }
 0x2e8   : > { %p987_p7 = pnand %p986_p4, %p1115_p5 }
 0x2e9   : > { %p992_p11 = por %p991_p10, %p990_p9 }
 0x2ea   : > { %p988_p8 = pneg %p987_p7 }
 0x2ec   : > { %p993_p12 = pnand %p992_p11, %p988_p8 }
 0x2ee   : > { %996 = shalt.err (!%p993_p12)
}
 0x2ef   : > { %911 = dma.vmem_to_hbm [thread:$0]  (%p1115_p5), %s727_s6, 16, %s1247_s10, %s714_s15  }
 0x2f0 PF: > { %p917_p13 = scmp.ge.s32.totalorder %s1031_s29, 2  ;;  %s738_s25 = sand.u32 1, %s1019_s26  }
 0x2f1   : > { %s739_s30 = scalar_lea.sflag [#allocation4], %s738_s25 }
 0x2f2   : > { %p914_p0 = pnand %p917_p13, %p1119_p6 }
 0x2f4   : > { %p915_p1 = pneg %p914_p0 }
 0x2f6   : > { %1014 = dma.done.wait (%p915_p1), %s739_s30, 16  }
 0x2f7   : > { %1016 = vsyncadd (%p915_p1), %s739_s30, 4294967280  ;;  %p19_p2 = scmp.ge.s32.totalorder %s1103_s8, 5   ;;  %s1292_s26 = smov %s1023_s27 }
 0x2f8   : > { %s1293_s27 = smov %s1027_s28  ;;  %s1294_s28 = smov %s1113_s11 }
 0x2f9   : > { %s1295_s29 = smov %s1103_s8  ;;  %21 = sbr.rel (!%p19_p2) target bundleno = 6 (0x6), region = 83 }
 0x2fe   :  { %743 = vsyncpa [#allocation4], 1 }
 0x2ff   :  { %745 = vsyncpa [#allocation4 + $0x1], 1 }

</bundles_post_ra>
